<compile_context>
chip_gen: v6e
topology: v6e:2x2x1
jax: 0.10.0
libtpu: 0.0.40
codegen_flags: <defaults>
</compile_context>

<pallas_src>
import math
from collections import namedtuple
from functools import partial

import jax
import jax.numpy as jnp
from jax.experimental import pallas as pl
from jax.experimental.pallas import tpu as pltpu

LANE = 128       # TPU lane width; every feature dim is zero-padded to this
SUB_BF16 = 16    # bf16 vregs pack 16 sublanes -> batch tiles rounded to multiples of 16
TB_MAX = 512     # batch-tile cap (sweep 512-1024); amortizes per-grid-step overhead

Layer = namedtuple("Layer", ["kind", "d_in", "d_out", "w_col", "p_row"])


def _round_up(x, m):
    return ((x + m - 1) // m) * m


# ------------------------------ static layout --------------------------------

def _build_layout(input_dim, hidden_dim, z_dim):
    """Per-linear-layer layout: lane offset into the bf16 weight slab and row
    offset into the f32 LayerNorm/bias slab (all offsets are Python statics)."""
    enc = [input_dim] + list(hidden_dim)
    dec = [input_dim] + list(hidden_dim) + [z_dim]
    specs = [("unit", enc[i], enc[i + 1]) for i in range(len(enc) - 1)]
    specs.append(("head", hidden_dim[-1], z_dim))                       # fused mu|logvar
    specs += [("unit", dec[i], dec[i - 1]) for i in range(len(dec) - 1, 0, -1)]

    layers, w_col, p_row = [], 0, 0
    for kind, din, dout in specs:
        layers.append(Layer(kind, din, dout, w_col, p_row))
        if kind == "unit":
            w_col += LANE          # (128, 128) weight block; rows: ln_w, ln_b, bias
            p_row += 3
        else:
            w_col += 2 * LANE      # (128, 256) weight block (mu | logvar); rows: b_mu, b_lv
            p_row += 2
    return layers, w_col, p_row


# ------------------------------ kernel helpers --------------------------------

def _masked_layer_norm(h, ln_w, ln_b, d_true, eps=1e-5):
    """LayerNorm over the first `d_true` lanes of a 128-lane-padded activation.
    Pad lanes of `h` are guaranteed zero; ln_w/ln_b are zero in pad lanes, so the
    output keeps zeros there (and all-zero padded batch rows stay benign)."""
    lane = jax.lax.broadcasted_iota(jnp.int32, h.shape, 1)
    mask = lane < d_true
    inv_d = 1.0 / float(d_true)
    mean = jnp.sum(h, axis=-1, keepdims=True) * inv_d          # pad lanes contribute 0
    centered = jnp.where(mask, h - mean, 0.0)
    var = jnp.sum(centered * centered, axis=-1, keepdims=True) * inv_d
    return centered * jax.lax.rsqrt(var + eps) * ln_w + ln_b


def _linear(h, W, b):
    # bf16 MXU operands, f32 accumulation, f32 bias add.
    return jnp.dot(h.astype(jnp.bfloat16), W, preferred_element_type=jnp.float32) + b


def make_vae_kernel(layers):
    def kernel(x_ref, eps_ref, w_ref, p_ref, recon_ref, mlv_ref):
        x = x_ref[...]                       # (TB, 128) f32; lanes >= input_dim are zero
        h = x
        mu = lv = None
        for L in layers:
            if L.kind == "unit":
                ln_w = p_ref[L.p_row:L.p_row + 1, :]
                ln_b = p_ref[L.p_row + 1:L.p_row + 2, :]
                b = p_ref[L.p_row + 2:L.p_row + 3, :]
                W = w_ref[:, L.w_col:L.w_col + LANE]
                h = _masked_layer_norm(h, ln_w, ln_b, L.d_in)
                h = jnp.maximum(_linear(h, W, b), 0.0)
                # TODO(synk): training-mode Dropout(p=0.5) omitted; inference-mode identity.
            else:
                # Fused mu|logvar head; split aligned on a 128-lane boundary -> free views.
                W = w_ref[:, L.w_col:L.w_col + 2 * LANE]
                s = jnp.dot(h.astype(jnp.bfloat16), W,
                            preferred_element_type=jnp.float32)          # (TB, 256)
                mu = s[:, :LANE] + p_ref[L.p_row:L.p_row + 1, :]
                lv = s[:, LANE:] + p_ref[L.p_row + 1:L.p_row + 2, :]
                # reparameterize: pad lanes of mu/lv/eps are zero -> z stays zero there.
                h = mu + eps_ref[...] * jnp.exp(0.5 * lv)
        recon_ref[...] = x + h               # full-lane, unmasked stores
        mlv_ref[:, :LANE] = mu
        mlv_ref[:, LANE:] = lv
    return kernel


# ------------------------------ parameter init --------------------------------

def _init_linear(key, din, dout):
    # PyTorch default Linear init: U(-1/sqrt(in), 1/sqrt(in)); pre-transposed to (in, out).
    kw, kb = jax.random.split(key)
    bound = 1.0 / math.sqrt(din)
    W = jax.random.uniform(kw, (dout, din), jnp.float32, -bound, bound).T
    b = jax.random.uniform(kb, (dout,), jnp.float32, -bound, bound)
    return W, b


def init_vae_params(key, input_dim, hidden_dim, z_dim):
    """Pack all parameters into two lane-dense, VMEM-resident slabs."""
    assert max([input_dim, z_dim, *hidden_dim]) <= LANE, "feature dims must be <= 128"
    layers, w_cols, p_rows = _build_layout(input_dim, hidden_dim, z_dim)
    w = jnp.zeros((LANE, w_cols), jnp.float32)
    p = jnp.zeros((_round_up(p_rows, 8), LANE), jnp.float32)

    n_linear = sum(2 if L.kind == "head" else 1 for L in layers)
    keys = iter(jax.random.split(key, n_linear))
    for L in layers:
        if L.kind == "unit":
            W, b = _init_linear(next(keys), L.d_in, L.d_out)
            w = w.at[:L.d_in, L.w_col:L.w_col + L.d_out].set(W)
            p = p.at[L.p_row, :L.d_in].set(1.0)                 # LN gamma (beta row stays 0)
            p = p.at[L.p_row + 2, :L.d_out].set(b)              # Linear bias
        else:
            Wmu, bmu = _init_linear(next(keys), L.d_in, L.d_out)
            Wlv, blv = _init_linear(next(keys), L.d_in, L.d_out)
            w = w.at[:L.d_in, L.w_col:L.w_col + L.d_out].set(Wmu)
            w = w.at[:L.d_in, L.w_col + LANE:L.w_col + LANE + L.d_out].set(Wlv)
            p = p.at[L.p_row, :L.d_out].set(bmu)
            p = p.at[L.p_row + 1, :L.d_out].set(blv)
    return w.astype(jnp.bfloat16), p


# ---------------------------------- wrapper -----------------------------------

def _choose_tile(B):
    b16 = _round_up(B, SUB_BF16)              # bf16 sublane packing
    if b16 <= 2 * SUB_BF16:
        return b16, 1                         # tiny batch: a single tile
    n_tiles = max(2, -(-b16 // TB_MAX))       # >=2 tiles so both v7x TensorCores get work
    tb = _round_up(-(-b16 // n_tiles), SUB_BF16)
    n_tiles = -(-B // tb)
    return tb, n_tiles


@partial(jax.jit, static_argnames=("input_dim", "hidden_dim", "z_dim"))
def vae_forward(x, eps, w_slab, p_slab, *, input_dim, hidden_dim, z_dim):
    B = x.shape[0]
    layers, _, _ = _build_layout(input_dim, hidden_dim, z_dim)
    TB, n_tiles = _choose_tile(B)
    B_pad = TB * n_tiles

    # Lane-dense, sublane-aligned input slabs (pad rows / lanes are zero).
    x_p = jnp.pad(x, ((0, B_pad - B), (0, LANE - input_dim)))
    eps_p = jnp.pad(eps, ((0, B_pad - B), (0, LANE - z_dim)))

    batch_spec = lambda width: pl.BlockSpec((TB, width), lambda b: (b, 0))
    resident = lambda a: pl.BlockSpec(a.shape, lambda b: (0, 0))   # weights stay VMEM-resident

    n_units = sum(1 for L in layers if L.kind == "unit")
    flops = 2 * B_pad * LANE * (n_units * LANE + 2 * LANE)
    transcendentals = B_pad * (LANE + n_units)
    bytes_accessed = (4 * B_pad * (3 * LANE + 2 * LANE)
                      + w_slab.size * w_slab.dtype.itemsize
                      + p_slab.size * p_slab.dtype.itemsize)

    recon, mlv = pl.pallas_call(
        make_vae_kernel(layers),
        grid=(n_tiles,),
        out_shape=(
            jax.ShapeDtypeStruct((B_pad, LANE), jnp.float32),
            jax.ShapeDtypeStruct((B_pad, 2 * LANE), jnp.float32),
        ),
        in_specs=[batch_spec(LANE), batch_spec(LANE), resident(w_slab), resident(p_slab)],
        out_specs=(batch_spec(LANE), batch_spec(2 * LANE)),
        compiler_params=pltpu.CompilerParams(dimension_semantics=("parallel",)),
        cost_estimate=pl.CostEstimate(
            flops=int(flops),
            transcendentals=int(transcendentals),
            bytes_accessed=int(bytes_accessed),
        ),
    )(x_p, eps_p, w_slab, p_slab)

    return recon[:B, :input_dim], mlv[:B, :z_dim], mlv[:B, LANE:LANE + z_dim]


# --------------------------- pure-JAX reference -------------------------------

def vae_reference(x, eps, w_slab, p_slab, *, input_dim, hidden_dim, z_dim):
    """f32 reference on the logical (unpadded) sub-blocks of the packed slabs."""
    layers, _, _ = _build_layout(input_dim, hidden_dim, z_dim)
    wf = w_slab.astype(jnp.float32)
    h = x
    mu = lv = None
    for L in layers:
        if L.kind == "unit":
            g = p_slab[L.p_row, :L.d_in]
            beta = p_slab[L.p_row + 1, :L.d_in]
            b = p_slab[L.p_row + 2, :L.d_out]
            W = wf[:L.d_in, L.w_col:L.w_col + L.d_out]
            mean = jnp.mean(h, axis=-1, keepdims=True)
            var = jnp.mean((h - mean) ** 2, axis=-1, keepdims=True)
            hn = (h - mean) * jax.lax.rsqrt(var + 1e-5) * g + beta
            h = jnp.maximum(hn @ W + b, 0.0)
        else:
            Wmu = wf[:L.d_in, L.w_col:L.w_col + L.d_out]
            Wlv = wf[:L.d_in, L.w_col + LANE:L.w_col + LANE + L.d_out]
            mu = h @ Wmu + p_slab[L.p_row, :L.d_out]
            lv = h @ Wlv + p_slab[L.p_row + 1, :L.d_out]
            h = mu + eps * jnp.exp(0.5 * lv)
    return x + h, mu, lv


# ------------------------------------ main ------------------------------------

if __name__ == "__main__":
    input_dim = 32
    hidden_dim = (64, 32)
    z_dim = 16
    batch = 8

    key = jax.random.PRNGKey(0)
    k_params, k_x, k_eps = jax.random.split(key, 3)

    w_slab, p_slab = init_vae_params(k_params, input_dim, hidden_dim, z_dim)
    x = jax.random.normal(k_x, (batch, input_dim), jnp.float32)
    eps = jax.random.normal(k_eps, (batch, z_dim), jnp.float32)

    recon_x, z_mu, z_logvar = vae_forward(
        x, eps, w_slab, p_slab, input_dim=input_dim, hidden_dim=hidden_dim, z_dim=z_dim
    )
    jax.block_until_ready((recon_x, z_mu, z_logvar))

    assert recon_x.shape == (batch, input_dim)
    assert z_mu.shape == (batch, z_dim)
    assert z_logvar.shape == (batch, z_dim)
    assert bool(jnp.all(jnp.isfinite(recon_x)))

    # Correctness vs f32 reference (kernel uses bf16 MXU operands -> loose tolerance).
    r_ref, mu_ref, lv_ref = vae_reference(
        x, eps, w_slab, p_slab, input_dim=input_dim, hidden_dim=hidden_dim, z_dim=z_dim
    )
    assert bool(jnp.allclose(recon_x, r_ref, atol=5e-2, rtol=5e-2))
    assert bool(jnp.allclose(z_mu, mu_ref, atol=5e-2, rtol=5e-2))
    assert bool(jnp.allclose(z_logvar, lv_ref, atol=5e-2, rtol=5e-2))

    print("KERNEL_OK")
</pallas_src>

<mosaic_0001>
module attributes {stable_mosaic.version = 11 : i64} {
  func.func @kernel(%arg0: i32, %arg1: memref<16x128xf32, #tpu.memory_space<vmem>>, %arg2: memref<16x128xf32, #tpu.memory_space<vmem>>, %arg3: memref<128x896xbf16, #tpu.memory_space<vmem>>, %arg4: memref<24x128xf32, #tpu.memory_space<vmem>>, %arg5: memref<16x128xf32, #tpu.memory_space<vmem>>, %arg6: memref<16x256xf32, #tpu.memory_space<vmem>>) attributes {dimension_semantics = [#tpu.dimension_semantics<parallel>], iteration_bounds = array<i64: 1>, scalar_prefetch = 0 : i64, scratch_operands = 0 : i64, tpu.core_type = #tpu.core_type<tc>, window_params = [{transform_indices = @transform_0, window_bounds = array<i64: 16, 128>}, {transform_indices = @transform_1, window_bounds = array<i64: 16, 128>}, {pipeline_mode = #tpu.pipeline_mode<synchronous>, transform_indices = @transform_2, window_bounds = array<i64: 128, 896>}, {pipeline_mode = #tpu.pipeline_mode<synchronous>, transform_indices = @transform_3, window_bounds = array<i64: 24, 128>}, {transform_indices = @transform_4, window_bounds = array<i64: 16, 128>}, {transform_indices = @transform_5, window_bounds = array<i64: 16, 256>}]} {
    %c0 = arith.constant 0 : index
    %c0_0 = arith.constant 0 : index
    %0 = vector.load %arg1[%c0, %c0_0] : memref<16x128xf32, #tpu.memory_space<vmem>>, vector<16x128xf32>
    %c0_1 = arith.constant 0 : index
    %c0_2 = arith.constant 0 : index
    %1 = vector.load %arg4[%c0_1, %c0_2] : memref<24x128xf32, #tpu.memory_space<vmem>>, vector<1x128xf32>
    %c1 = arith.constant 1 : index
    %c0_3 = arith.constant 0 : index
    %2 = vector.load %arg4[%c1, %c0_3] : memref<24x128xf32, #tpu.memory_space<vmem>>, vector<1x128xf32>
    %c2 = arith.constant 2 : index
    %c0_4 = arith.constant 0 : index
    %3 = vector.load %arg4[%c2, %c0_4] : memref<24x128xf32, #tpu.memory_space<vmem>>, vector<1x128xf32>
    %c0_5 = arith.constant 0 : index
    %c0_6 = arith.constant 0 : index
    %4 = vector.load %arg3[%c0_5, %c0_6] : memref<128x896xbf16, #tpu.memory_space<vmem>>, vector<128x128xbf16>
    %5 = tpu.iota {dimensions = array<i32: 1>} : vector<16x128xi32>
    %c32_i32 = arith.constant 32 : i32
    %6 = vector.broadcast %c32_i32 : i32 to vector<16x128xi32>
    %7 = arith.cmpi slt, %5, %6 : vector<16x128xi32>
    %cst = arith.constant dense<0.000000e+00> : vector<16xf32>
    %8 = vector.multi_reduction <add>, %0, %cst [1] : vector<16x128xf32> to vector<16xf32>
    %9 = vector.shape_cast %8 : vector<16xf32> to vector<16x1xf32>
    %cst_7 = arith.constant 3.125000e-02 : f32
    %10 = vector.broadcast %cst_7 : f32 to vector<16x1xf32>
    %11 = arith.mulf %9, %10 : vector<16x1xf32>
    %12 = vector.broadcast %11 : vector<16x1xf32> to vector<16x128xf32>
    %13 = arith.subf %0, %12 : vector<16x128xf32>
    %cst_8 = arith.constant 0.000000e+00 : f32
    %14 = vector.broadcast %cst_8 : f32 to vector<16x128xf32>
    %15 = arith.select %7, %13, %14 : vector<16x128xi1>, vector<16x128xf32>
    %16 = arith.mulf %15, %15 : vector<16x128xf32>
    %cst_9 = arith.constant dense<0.000000e+00> : vector<16xf32>
    %17 = vector.multi_reduction <add>, %16, %cst_9 [1] : vector<16x128xf32> to vector<16xf32>
    %18 = vector.shape_cast %17 : vector<16xf32> to vector<16x1xf32>
    %cst_10 = arith.constant 3.125000e-02 : f32
    %19 = vector.broadcast %cst_10 : f32 to vector<16x1xf32>
    %20 = arith.mulf %18, %19 : vector<16x1xf32>
    %cst_11 = arith.constant 9.99999974E-6 : f32
    %21 = vector.broadcast %cst_11 : f32 to vector<16x1xf32>
    %22 = arith.addf %20, %21 : vector<16x1xf32>
    %23 = math.rsqrt %22 : vector<16x1xf32>
    %24 = vector.broadcast %23 : vector<16x1xf32> to vector<16x128xf32>
    %25 = arith.mulf %15, %24 : vector<16x128xf32>
    %26 = vector.broadcast %1 : vector<1x128xf32> to vector<16x128xf32>
    %27 = arith.mulf %25, %26 : vector<16x128xf32>
    %28 = vector.broadcast %2 : vector<1x128xf32> to vector<16x128xf32>
    %29 = arith.addf %27, %28 : vector<16x128xf32>
    %30 = arith.truncf %29 : vector<16x128xf32> to vector<16x128xbf16>
    %cst_12 = arith.constant dense<0.000000e+00> : vector<16x128xf32>
    %31 = tpu.matmul %30, %4, %cst_12 {dimension_numbers = #tpu.dot_dimension_numbers<[1], [0], [0], [1], [0, 0, 1, 1], [], []>} : vector<16x128xbf16>, vector<128x128xbf16>, vector<16x128xf32> -> vector<16x128xf32>
    %32 = vector.broadcast %3 : vector<1x128xf32> to vector<16x128xf32>
    %33 = arith.addf %31, %32 : vector<16x128xf32>
    %cst_13 = arith.constant 0.000000e+00 : f32
    %34 = vector.broadcast %cst_13 : f32 to vector<16x128xf32>
    %35 = arith.maximumf %33, %34 : vector<16x128xf32>
    %c3 = arith.constant 3 : index
    %c0_14 = arith.constant 0 : index
    %36 = vector.load %arg4[%c3, %c0_14] : memref<24x128xf32, #tpu.memory_space<vmem>>, vector<1x128xf32>
    %c4 = arith.constant 4 : index
    %c0_15 = arith.constant 0 : index
    %37 = vector.load %arg4[%c4, %c0_15] : memref<24x128xf32, #tpu.memory_space<vmem>>, vector<1x128xf32>
    %c5 = arith.constant 5 : index
    %c0_16 = arith.constant 0 : index
    %38 = vector.load %arg4[%c5, %c0_16] : memref<24x128xf32, #tpu.memory_space<vmem>>, vector<1x128xf32>
    %c0_17 = arith.constant 0 : index
    %c128 = arith.constant 128 : index
    %39 = vector.load %arg3[%c0_17, %c128] : memref<128x896xbf16, #tpu.memory_space<vmem>>, vector<128x128xbf16>
    %40 = tpu.iota {dimensions = array<i32: 1>} : vector<16x128xi32>
    %c64_i32 = arith.constant 64 : i32
    %41 = vector.broadcast %c64_i32 : i32 to vector<16x128xi32>
    %42 = arith.cmpi slt, %40, %41 : vector<16x128xi32>
    %cst_18 = arith.constant dense<0.000000e+00> : vector<16xf32>
    %43 = vector.multi_reduction <add>, %35, %cst_18 [1] : vector<16x128xf32> to vector<16xf32>
    %44 = vector.shape_cast %43 : vector<16xf32> to vector<16x1xf32>
    %cst_19 = arith.constant 1.562500e-02 : f32
    %45 = vector.broadcast %cst_19 : f32 to vector<16x1xf32>
    %46 = arith.mulf %44, %45 : vector<16x1xf32>
    %47 = vector.broadcast %46 : vector<16x1xf32> to vector<16x128xf32>
    %48 = arith.subf %35, %47 : vector<16x128xf32>
    %cst_20 = arith.constant 0.000000e+00 : f32
    %49 = vector.broadcast %cst_20 : f32 to vector<16x128xf32>
    %50 = arith.select %42, %48, %49 : vector<16x128xi1>, vector<16x128xf32>
    %51 = arith.mulf %50, %50 : vector<16x128xf32>
    %cst_21 = arith.constant dense<0.000000e+00> : vector<16xf32>
    %52 = vector.multi_reduction <add>, %51, %cst_21 [1] : vector<16x128xf32> to vector<16xf32>
    %53 = vector.shape_cast %52 : vector<16xf32> to vector<16x1xf32>
    %cst_22 = arith.constant 1.562500e-02 : f32
    %54 = vector.broadcast %cst_22 : f32 to vector<16x1xf32>
    %55 = arith.mulf %53, %54 : vector<16x1xf32>
    %cst_23 = arith.constant 9.99999974E-6 : f32
    %56 = vector.broadcast %cst_23 : f32 to vector<16x1xf32>
    %57 = arith.addf %55, %56 : vector<16x1xf32>
    %58 = math.rsqrt %57 : vector<16x1xf32>
    %59 = vector.broadcast %58 : vector<16x1xf32> to vector<16x128xf32>
    %60 = arith.mulf %50, %59 : vector<16x128xf32>
    %61 = vector.broadcast %36 : vector<1x128xf32> to vector<16x128xf32>
    %62 = arith.mulf %60, %61 : vector<16x128xf32>
    %63 = vector.broadcast %37 : vector<1x128xf32> to vector<16x128xf32>
    %64 = arith.addf %62, %63 : vector<16x128xf32>
    %65 = arith.truncf %64 : vector<16x128xf32> to vector<16x128xbf16>
    %cst_24 = arith.constant dense<0.000000e+00> : vector<16x128xf32>
    %66 = tpu.matmul %65, %39, %cst_24 {dimension_numbers = #tpu.dot_dimension_numbers<[1], [0], [0], [1], [0, 0, 1, 1], [], []>} : vector<16x128xbf16>, vector<128x128xbf16>, vector<16x128xf32> -> vector<16x128xf32>
    %67 = vector.broadcast %38 : vector<1x128xf32> to vector<16x128xf32>
    %68 = arith.addf %66, %67 : vector<16x128xf32>
    %cst_25 = arith.constant 0.000000e+00 : f32
    %69 = vector.broadcast %cst_25 : f32 to vector<16x128xf32>
    %70 = arith.maximumf %68, %69 : vector<16x128xf32>
    %c0_26 = arith.constant 0 : index
    %c256 = arith.constant 256 : index
    %71 = vector.load %arg3[%c0_26, %c256] : memref<128x896xbf16, #tpu.memory_space<vmem>>, vector<128x256xbf16>
    %72 = arith.truncf %70 : vector<16x128xf32> to vector<16x128xbf16>
    %cst_27 = arith.constant dense<0.000000e+00> : vector<16x256xf32>
    %73 = tpu.matmul %72, %71, %cst_27 {dimension_numbers = #tpu.dot_dimension_numbers<[1], [0], [0], [1], [0, 0, 1, 1], [], []>} : vector<16x128xbf16>, vector<128x256xbf16>, vector<16x256xf32> -> vector<16x256xf32>
    %74 = vector.extract_strided_slice %73 {offsets = [0, 0], sizes = [16, 128], strides = [1, 1]} : vector<16x256xf32> to vector<16x128xf32>
    %c6 = arith.constant 6 : index
    %c0_28 = arith.constant 0 : index
    %75 = vector.load %arg4[%c6, %c0_28] : memref<24x128xf32, #tpu.memory_space<vmem>>, vector<1x128xf32>
    %76 = vector.broadcast %75 : vector<1x128xf32> to vector<16x128xf32>
    %77 = arith.addf %74, %76 : vector<16x128xf32>
    %78 = vector.extract_strided_slice %73 {offsets = [0, 128], sizes = [16, 128], strides = [1, 1]} : vector<16x256xf32> to vector<16x128xf32>
    %c7 = arith.constant 7 : index
    %c0_29 = arith.constant 0 : index
    %79 = vector.load %arg4[%c7, %c0_29] : memref<24x128xf32, #tpu.memory_space<vmem>>, vector<1x128xf32>
    %80 = vector.broadcast %79 : vector<1x128xf32> to vector<16x128xf32>
    %81 = arith.addf %78, %80 : vector<16x128xf32>
    %c0_30 = arith.constant 0 : index
    %c0_31 = arith.constant 0 : index
    %82 = vector.load %arg2[%c0_30, %c0_31] : memref<16x128xf32, #tpu.memory_space<vmem>>, vector<16x128xf32>
    %cst_32 = arith.constant 5.000000e-01 : f32
    %83 = vector.broadcast %cst_32 : f32 to vector<16x128xf32>
    %84 = arith.mulf %83, %81 : vector<16x128xf32>
    %85 = math.exp %84 : vector<16x128xf32>
    %86 = arith.mulf %82, %85 : vector<16x128xf32>
    %87 = arith.addf %77, %86 : vector<16x128xf32>
    %c8 = arith.constant 8 : index
    %c0_33 = arith.constant 0 : index
    %88 = vector.load %arg4[%c8, %c0_33] : memref<24x128xf32, #tpu.memory_space<vmem>>, vector<1x128xf32>
    %c9 = arith.constant 9 : index
    %c0_34 = arith.constant 0 : index
    %89 = vector.load %arg4[%c9, %c0_34] : memref<24x128xf32, #tpu.memory_space<vmem>>, vector<1x128xf32>
    %c10 = arith.constant 10 : index
    %c0_35 = arith.constant 0 : index
    %90 = vector.load %arg4[%c10, %c0_35] : memref<24x128xf32, #tpu.memory_space<vmem>>, vector<1x128xf32>
    %c0_36 = arith.constant 0 : index
    %c512 = arith.constant 512 : index
    %91 = vector.load %arg3[%c0_36, %c512] : memref<128x896xbf16, #tpu.memory_space<vmem>>, vector<128x128xbf16>
    %92 = tpu.iota {dimensions = array<i32: 1>} : vector<16x128xi32>
    %c16_i32 = arith.constant 16 : i32
    %93 = vector.broadcast %c16_i32 : i32 to vector<16x128xi32>
    %94 = arith.cmpi slt, %92, %93 : vector<16x128xi32>
    %cst_37 = arith.constant dense<0.000000e+00> : vector<16xf32>
    %95 = vector.multi_reduction <add>, %87, %cst_37 [1] : vector<16x128xf32> to vector<16xf32>
    %96 = vector.shape_cast %95 : vector<16xf32> to vector<16x1xf32>
    %cst_38 = arith.constant 6.250000e-02 : f32
    %97 = vector.broadcast %cst_38 : f32 to vector<16x1xf32>
    %98 = arith.mulf %96, %97 : vector<16x1xf32>
    %99 = vector.broadcast %98 : vector<16x1xf32> to vector<16x128xf32>
    %100 = arith.subf %87, %99 : vector<16x128xf32>
    %cst_39 = arith.constant 0.000000e+00 : f32
    %101 = vector.broadcast %cst_39 : f32 to vector<16x128xf32>
    %102 = arith.select %94, %100, %101 : vector<16x128xi1>, vector<16x128xf32>
    %103 = arith.mulf %102, %102 : vector<16x128xf32>
    %cst_40 = arith.constant dense<0.000000e+00> : vector<16xf32>
    %104 = vector.multi_reduction <add>, %103, %cst_40 [1] : vector<16x128xf32> to vector<16xf32>
    %105 = vector.shape_cast %104 : vector<16xf32> to vector<16x1xf32>
    %cst_41 = arith.constant 6.250000e-02 : f32
    %106 = vector.broadcast %cst_41 : f32 to vector<16x1xf32>
    %107 = arith.mulf %105, %106 : vector<16x1xf32>
    %cst_42 = arith.constant 9.99999974E-6 : f32
    %108 = vector.broadcast %cst_42 : f32 to vector<16x1xf32>
    %109 = arith.addf %107, %108 : vector<16x1xf32>
    %110 = math.rsqrt %109 : vector<16x1xf32>
    %111 = vector.broadcast %110 : vector<16x1xf32> to vector<16x128xf32>
    %112 = arith.mulf %102, %111 : vector<16x128xf32>
    %113 = vector.broadcast %88 : vector<1x128xf32> to vector<16x128xf32>
    %114 = arith.mulf %112, %113 : vector<16x128xf32>
    %115 = vector.broadcast %89 : vector<1x128xf32> to vector<16x128xf32>
    %116 = arith.addf %114, %115 : vector<16x128xf32>
    %117 = arith.truncf %116 : vector<16x128xf32> to vector<16x128xbf16>
    %cst_43 = arith.constant dense<0.000000e+00> : vector<16x128xf32>
    %118 = tpu.matmul %117, %91, %cst_43 {dimension_numbers = #tpu.dot_dimension_numbers<[1], [0], [0], [1], [0, 0, 1, 1], [], []>} : vector<16x128xbf16>, vector<128x128xbf16>, vector<16x128xf32> -> vector<16x128xf32>
    %119 = vector.broadcast %90 : vector<1x128xf32> to vector<16x128xf32>
    %120 = arith.addf %118, %119 : vector<16x128xf32>
    %cst_44 = arith.constant 0.000000e+00 : f32
    %121 = vector.broadcast %cst_44 : f32 to vector<16x128xf32>
    %122 = arith.maximumf %120, %121 : vector<16x128xf32>
    %c11 = arith.constant 11 : index
    %c0_45 = arith.constant 0 : index
    %123 = vector.load %arg4[%c11, %c0_45] : memref<24x128xf32, #tpu.memory_space<vmem>>, vector<1x128xf32>
    %c12 = arith.constant 12 : index
    %c0_46 = arith.constant 0 : index
    %124 = vector.load %arg4[%c12, %c0_46] : memref<24x128xf32, #tpu.memory_space<vmem>>, vector<1x128xf32>
    %c13 = arith.constant 13 : index
    %c0_47 = arith.constant 0 : index
    %125 = vector.load %arg4[%c13, %c0_47] : memref<24x128xf32, #tpu.memory_space<vmem>>, vector<1x128xf32>
    %c0_48 = arith.constant 0 : index
    %c640 = arith.constant 640 : index
    %126 = vector.load %arg3[%c0_48, %c640] : memref<128x896xbf16, #tpu.memory_space<vmem>>, vector<128x128xbf16>
    %127 = tpu.iota {dimensions = array<i32: 1>} : vector<16x128xi32>
    %c32_i32_49 = arith.constant 32 : i32
    %128 = vector.broadcast %c32_i32_49 : i32 to vector<16x128xi32>
    %129 = arith.cmpi slt, %127, %128 : vector<16x128xi32>
    %cst_50 = arith.constant dense<0.000000e+00> : vector<16xf32>
    %130 = vector.multi_reduction <add>, %122, %cst_50 [1] : vector<16x128xf32> to vector<16xf32>
    %131 = vector.shape_cast %130 : vector<16xf32> to vector<16x1xf32>
    %cst_51 = arith.constant 3.125000e-02 : f32
    %132 = vector.broadcast %cst_51 : f32 to vector<16x1xf32>
    %133 = arith.mulf %131, %132 : vector<16x1xf32>
    %134 = vector.broadcast %133 : vector<16x1xf32> to vector<16x128xf32>
    %135 = arith.subf %122, %134 : vector<16x128xf32>
    %cst_52 = arith.constant 0.000000e+00 : f32
    %136 = vector.broadcast %cst_52 : f32 to vector<16x128xf32>
    %137 = arith.select %129, %135, %136 : vector<16x128xi1>, vector<16x128xf32>
    %138 = arith.mulf %137, %137 : vector<16x128xf32>
    %cst_53 = arith.constant dense<0.000000e+00> : vector<16xf32>
    %139 = vector.multi_reduction <add>, %138, %cst_53 [1] : vector<16x128xf32> to vector<16xf32>
    %140 = vector.shape_cast %139 : vector<16xf32> to vector<16x1xf32>
    %cst_54 = arith.constant 3.125000e-02 : f32
    %141 = vector.broadcast %cst_54 : f32 to vector<16x1xf32>
    %142 = arith.mulf %140, %141 : vector<16x1xf32>
    %cst_55 = arith.constant 9.99999974E-6 : f32
    %143 = vector.broadcast %cst_55 : f32 to vector<16x1xf32>
    %144 = arith.addf %142, %143 : vector<16x1xf32>
    %145 = math.rsqrt %144 : vector<16x1xf32>
    %146 = vector.broadcast %145 : vector<16x1xf32> to vector<16x128xf32>
    %147 = arith.mulf %137, %146 : vector<16x128xf32>
    %148 = vector.broadcast %123 : vector<1x128xf32> to vector<16x128xf32>
    %149 = arith.mulf %147, %148 : vector<16x128xf32>
    %150 = vector.broadcast %124 : vector<1x128xf32> to vector<16x128xf32>
    %151 = arith.addf %149, %150 : vector<16x128xf32>
    %152 = arith.truncf %151 : vector<16x128xf32> to vector<16x128xbf16>
    %cst_56 = arith.constant dense<0.000000e+00> : vector<16x128xf32>
    %153 = tpu.matmul %152, %126, %cst_56 {dimension_numbers = #tpu.dot_dimension_numbers<[1], [0], [0], [1], [0, 0, 1, 1], [], []>} : vector<16x128xbf16>, vector<128x128xbf16>, vector<16x128xf32> -> vector<16x128xf32>
    %154 = vector.broadcast %125 : vector<1x128xf32> to vector<16x128xf32>
    %155 = arith.addf %153, %154 : vector<16x128xf32>
    %cst_57 = arith.constant 0.000000e+00 : f32
    %156 = vector.broadcast %cst_57 : f32 to vector<16x128xf32>
    %157 = arith.maximumf %155, %156 : vector<16x128xf32>
    %c14 = arith.constant 14 : index
    %c0_58 = arith.constant 0 : index
    %158 = vector.load %arg4[%c14, %c0_58] : memref<24x128xf32, #tpu.memory_space<vmem>>, vector<1x128xf32>
    %c15 = arith.constant 15 : index
    %c0_59 = arith.constant 0 : index
    %159 = vector.load %arg4[%c15, %c0_59] : memref<24x128xf32, #tpu.memory_space<vmem>>, vector<1x128xf32>
    %c16 = arith.constant 16 : index
    %c0_60 = arith.constant 0 : index
    %160 = vector.load %arg4[%c16, %c0_60] : memref<24x128xf32, #tpu.memory_space<vmem>>, vector<1x128xf32>
    %c0_61 = arith.constant 0 : index
    %c768 = arith.constant 768 : index
    %161 = vector.load %arg3[%c0_61, %c768] : memref<128x896xbf16, #tpu.memory_space<vmem>>, vector<128x128xbf16>
    %162 = tpu.iota {dimensions = array<i32: 1>} : vector<16x128xi32>
    %c64_i32_62 = arith.constant 64 : i32
    %163 = vector.broadcast %c64_i32_62 : i32 to vector<16x128xi32>
    %164 = arith.cmpi slt, %162, %163 : vector<16x128xi32>
    %cst_63 = arith.constant dense<0.000000e+00> : vector<16xf32>
    %165 = vector.multi_reduction <add>, %157, %cst_63 [1] : vector<16x128xf32> to vector<16xf32>
    %166 = vector.shape_cast %165 : vector<16xf32> to vector<16x1xf32>
    %cst_64 = arith.constant 1.562500e-02 : f32
    %167 = vector.broadcast %cst_64 : f32 to vector<16x1xf32>
    %168 = arith.mulf %166, %167 : vector<16x1xf32>
    %169 = vector.broadcast %168 : vector<16x1xf32> to vector<16x128xf32>
    %170 = arith.subf %157, %169 : vector<16x128xf32>
    %cst_65 = arith.constant 0.000000e+00 : f32
    %171 = vector.broadcast %cst_65 : f32 to vector<16x128xf32>
    %172 = arith.select %164, %170, %171 : vector<16x128xi1>, vector<16x128xf32>
    %173 = arith.mulf %172, %172 : vector<16x128xf32>
    %cst_66 = arith.constant dense<0.000000e+00> : vector<16xf32>
    %174 = vector.multi_reduction <add>, %173, %cst_66 [1] : vector<16x128xf32> to vector<16xf32>
    %175 = vector.shape_cast %174 : vector<16xf32> to vector<16x1xf32>
    %cst_67 = arith.constant 1.562500e-02 : f32
    %176 = vector.broadcast %cst_67 : f32 to vector<16x1xf32>
    %177 = arith.mulf %175, %176 : vector<16x1xf32>
    %cst_68 = arith.constant 9.99999974E-6 : f32
    %178 = vector.broadcast %cst_68 : f32 to vector<16x1xf32>
    %179 = arith.addf %177, %178 : vector<16x1xf32>
    %180 = math.rsqrt %179 : vector<16x1xf32>
    %181 = vector.broadcast %180 : vector<16x1xf32> to vector<16x128xf32>
    %182 = arith.mulf %172, %181 : vector<16x128xf32>
    %183 = vector.broadcast %158 : vector<1x128xf32> to vector<16x128xf32>
    %184 = arith.mulf %182, %183 : vector<16x128xf32>
    %185 = vector.broadcast %159 : vector<1x128xf32> to vector<16x128xf32>
    %186 = arith.addf %184, %185 : vector<16x128xf32>
    %187 = arith.truncf %186 : vector<16x128xf32> to vector<16x128xbf16>
    %cst_69 = arith.constant dense<0.000000e+00> : vector<16x128xf32>
    %188 = tpu.matmul %187, %161, %cst_69 {dimension_numbers = #tpu.dot_dimension_numbers<[1], [0], [0], [1], [0, 0, 1, 1], [], []>} : vector<16x128xbf16>, vector<128x128xbf16>, vector<16x128xf32> -> vector<16x128xf32>
    %189 = vector.broadcast %160 : vector<1x128xf32> to vector<16x128xf32>
    %190 = arith.addf %188, %189 : vector<16x128xf32>
    %cst_70 = arith.constant 0.000000e+00 : f32
    %191 = vector.broadcast %cst_70 : f32 to vector<16x128xf32>
    %192 = arith.maximumf %190, %191 : vector<16x128xf32>
    %193 = arith.addf %0, %192 : vector<16x128xf32>
    %c0_71 = arith.constant 0 : index
    %c0_72 = arith.constant 0 : index
    %194 = vector.load %arg5[%c0_71, %c0_72] : memref<16x128xf32, #tpu.memory_space<vmem>>, vector<16x128xf32>
    tpu.vector_store %arg5[%c0_71, %c0_72], %193 {strides = array<i32>} : memref<16x128xf32, #tpu.memory_space<vmem>>, vector<16x128xf32>,
    %c0_73 = arith.constant 0 : index
    %c0_74 = arith.constant 0 : index
    %195 = vector.load %arg6[%c0_73, %c0_74] : memref<16x256xf32, #tpu.memory_space<vmem>>, vector<16x128xf32>
    tpu.vector_store %arg6[%c0_73, %c0_74], %77 {strides = array<i32>} : memref<16x256xf32, #tpu.memory_space<vmem>>, vector<16x128xf32>,
    %c0_75 = arith.constant 0 : index
    %c128_76 = arith.constant 128 : index
    %196 = vector.load %arg6[%c0_75, %c128_76] : memref<16x256xf32, #tpu.memory_space<vmem>>, vector<16x128xf32>
    tpu.vector_store %arg6[%c0_75, %c128_76], %81 {strides = array<i32>} : memref<16x256xf32, #tpu.memory_space<vmem>>, vector<16x128xf32>,
    return
  }
  func.func @transform_0(%arg0: i32) -> (i32, i32) {
    %c0_i32 = arith.constant 0 : i32
    %c0_i32_0 = arith.constant 0 : i32
    return %arg0, %c0_i32 : i32, i32
  }
  func.func @transform_1(%arg0: i32) -> (i32, i32) {
    %c0_i32 = arith.constant 0 : i32
    %c0_i32_0 = arith.constant 0 : i32
    return %arg0, %c0_i32 : i32, i32
  }
  func.func @transform_2(%arg0: i32) -> (i32, i32) {
    %c0_i32 = arith.constant 0 : i32
    %c0_i32_0 = arith.constant 0 : i32
    %c0_i32_1 = arith.constant 0 : i32
    return %c0_i32, %c0_i32_0 : i32, i32
  }
  func.func @transform_3(%arg0: i32) -> (i32, i32) {
    %c0_i32 = arith.constant 0 : i32
    %c0_i32_0 = arith.constant 0 : i32
    %c0_i32_1 = arith.constant 0 : i32
    return %c0_i32, %c0_i32_0 : i32, i32
  }
  func.func @transform_4(%arg0: i32) -> (i32, i32) {
    %c0_i32 = arith.constant 0 : i32
    %c0_i32_0 = arith.constant 0 : i32
    return %arg0, %c0_i32 : i32, i32
  }
  func.func @transform_5(%arg0: i32) -> (i32, i32) {
    %c0_i32 = arith.constant 0 : i32
    %c0_i32_0 = arith.constant 0 : i32
    return %arg0, %c0_i32 : i32, i32
  }
}

</mosaic_0001>

<bundles_post_ra>
// kernel: vae_forward.1
= control target key start
LH: loop header
LB: loop body
LE: loop exit
PB: predicated region body
PF: predicated region fallthrough
CT: control target
= control target key end

     0   :  { %11 = vsyncpa [#allocation3], 0  ;;  %s1313_s18 = smov [#allocation2]   ;;  %s1514_s0 = inlined_call_operand.vmem [shape: f32[16,128], index: 0, kind: input, shape index: {}]   ;;  %s1515_s1 = inlined_call_operand.vmem [shape: f32[16,128], index: 1, kind: input, shape index: {}]   ;;  %s1516_s2 = inlined_call_operand.hbm [shape: bf16[128,896], index: 2, kind: input, shape index: {}]   ;;  %s1517_s3 = inlined_call_operand.vmem [shape: f32[24,128], index: 3, kind: input, shape index: {}]   ;;  %s1518_s4 = inlined_call_operand.vmem [shape: f32[16,128], index: 4, kind: output, shape index: {0}]   ;;  %s1519_s5 = inlined_call_operand.vmem [shape: f32[16,256], index: 5, kind: output, shape index: {1}]  }
   0x1   :  { %s21_s19 = sshll.u32 %s1313_s18, 4  ;;  %s22_s19 = int_to_ptr.vmem [resolvable:$true] %s21_s19 }
   0x2   :  { %s1299_s20 = scalar_lea.vmem %s22_s19, 7168  ;;  %p1304_p1 = scmp.lt.s32.totalorder %s22_s19, %s22_s19 }
   0x3   :  { %p1300_p0 = scmp.ne.s32.totalorder %s22_s19, %s1299_s20  ;;  %p1305_p2 = scmp.lt.s32.totalorder %s1299_s20, %s1299_s20 }
   0x5   :  { %p1306_p3 = por %p1305_p2, %p1304_p1 }
   0x7   :  { %p1307_p4 = pnand %p1306_p3, %p1300_p0 }
   0x9   :  { %1310 = shalt.err (!%p1307_p4)
}
   0xa   :  { %s1314_s21 = smov 448   ;;  %s1315_s22 = smov 28  }
   0xb   :  { %27 = dma.hbm_to_vmem [thread:$0]  %s1516_s2, 7168, %s22_s19, [#allocation3], %s1314_s21, %s1314_s21, %s1315_s22  }
   0xc   :  { %1311 = dma.done.wait [#allocation3], 7168  }
   0xd   :  { %1312 = vsyncadd [#allocation3], 4294960128  ;;  %v1355_v0 = vld [vmem:[%s1514_s0] sm:$0xff]  ;;  %v1360_v1 = vld [vmem:[%s1514_s0 + $0x8] sm:$0xff]  ;;  %v1316_v3 = vmov 0.0   ;;  %v55_v4 = vlaneseq  ;;  %vm1317_vm1 = vmmov 0  }
   0xe   :  { %58 = vadd.xlane.f32.xlu0 %v1355_v0  ;;  %v1203_v2 = vld [vmem:[#allocation2 + $0x188] ss:$28 sps:$4 sm:$0xff]   ;;  %1097 = vmatprep.subr.bf16.mxu0 %v1316_v3  ;;  %v1204_v16 = vld [vmem:[#allocation2 + $0x150] ss:$28 sps:$4 sm:$0xff]   ;;  %v1205_v17 = vld [vmem:[#allocation2 + $0x118] ss:$28 sps:$4 sm:$0xff]  }
   0xf   :  { %1117 = vmatprep.subr.bf16.mxu1 %v1316_v3  ;;  %1098 = vmatpush3.bf16.msra.mxu0 %v1203_v2  ;;  %v1367_v5 = vand.u32 127, %v55_v4  ;;  %v1206_v18 = vld [vmem:[#allocation2 + $0xe0] ss:$28 sps:$4 sm:$0xff]   ;;  %v1207_v19 = vld [vmem:[#allocation2 + $0xa8] ss:$28 sps:$4 sm:$0xff]  }
  0x10   :  { %1099 = vmatprep.subr.bf16.mxu0 %v1316_v3  ;;  %1113 = vmatprep.mubr.msk.bf16.mxu0 %vm1317_vm1, %v1316_v3  ;;  %v1208_v20 = vld [vmem:[#allocation2 + $0x70] ss:$28 sps:$4 sm:$0xff]   ;;  %v1209_v21 = vld [vmem:[#allocation2 + $0x38] ss:$28 sps:$4 sm:$0xff]   ;;  %v1210_v22 = vld [vmem:[#allocation2] ss:$28 sps:$4 sm:$0xff]  }
  0x11   :  { %vm57_vm0 = vcmp.lt.s32.totalorder %v1367_v5, 32  ;;  %1133 = vmatprep.mubr.msk.bf16.mxu1 %vm1317_vm1, %v1316_v3  ;;  %v979_v31 = vld [vmem:[%s1517_s3] ss:$0 sm:$0xff]  ;;  %v980_v35 = vld [vmem:[%s1517_s3 + $0x1] ss:$0 sm:$0xff]  ;;  %vm209_vm2 = vcmp.lt.s32.totalorder %v1367_v5, 64 }
  0x12   :  { %60 = vadd.xlane.f32.xlu0 %v1360_v1  ;;  %v981_v40 = vld [vmem:[%s1517_s3 + $0x2] ss:$0 sm:$0xff]  ;;  %v1211_v49 = vld [vmem:[#allocation2 + $0x18c] ss:$28 sps:$4 sm:$0xff]   ;;  %v1212_v60 = vld [vmem:[#allocation2 + $0x154] ss:$28 sps:$4 sm:$0xff]  }
  0x13   :  { %1100 = vmatpush3.bf16.msra.mxu0 %v1204_v16  ;;  %1118 = vmatpush3.bf16.msra.mxu1 %v1211_v49  ;;  %v1213_v61 = vld [vmem:[#allocation2 + $0x11c] ss:$28 sps:$4 sm:$0xff]   ;;  %v1214_v62 = vld [vmem:[#allocation2 + $0xe4] ss:$28 sps:$4 sm:$0xff]   ;;  %v1215_v63 = vld [vmem:[#allocation2 + $0xac] ss:$28 sps:$4 sm:$0xff]  }
  0x14   :  { %1101 = vmatprep.subr.bf16.mxu0 %v1316_v3  ;;  %1119 = vmatprep.subr.bf16.mxu1 %v1316_v3  ;;  %v1216_v2 = vld [vmem:[#allocation2 + $0x74] ss:$28 sps:$4 sm:$0xff]   ;;  %v1217_v4 = vld [vmem:[#allocation2 + $0x3c] ss:$28 sps:$4 sm:$0xff]   ;;  %vm527_vm3 = vcmp.lt.s32.totalorder %v1367_v5, 16 }
  0x15   :  { %v1231_v16 = vld [vmem:[#allocation2 + $0xb0] ss:$28 sps:$4 sm:$0xff]  }
  0x16   :  { %v1265_v5 = vld [vmem:[#allocation2 + $0x50] ss:$28 sps:$4 sm:$0xff]  }
  0x17   :  { %1102 = vmatpush3.bf16.msra.mxu0 %v1205_v17  ;;  %1120 = vmatpush3.bf16.msra.mxu1 %v1212_v60  ;;  %v1236_v17 = vld [vmem:[#allocation2 + $0x7c] ss:$28 sps:$4 sm:$0xff]  }
  0x18   :  { %1103 = vmatprep.subr.bf16.mxu0 %v1316_v3  ;;  %1121 = vmatprep.subr.bf16.mxu1 %v1316_v3 }
  0x1b   :  { %1104 = vmatpush3.bf16.msra.mxu0 %v1206_v18  ;;  %1122 = vmatpush3.bf16.msra.mxu1 %v1213_v61  ;;  %v1234_v18 = vld [vmem:[#allocation2 + $0x78] ss:$28 sps:$4 sm:$0xff]  }
  0x1c   :  { %1105 = vmatprep.subr.bf16.mxu0 %v1316_v3  ;;  %1123 = vmatprep.subr.bf16.mxu1 %v1316_v3 }
  0x1f   :  { %1106 = vmatpush3.bf16.msra.mxu0 %v1207_v19  ;;  %1124 = vmatpush3.bf16.msra.mxu1 %v1214_v62 }
  0x20   :  { %1107 = vmatprep.subr.bf16.mxu0 %v1316_v3  ;;  %1125 = vmatprep.subr.bf16.mxu1 %v1316_v3 }
  0x23   :  { %1108 = vmatpush3.bf16.msra.mxu0 %v1208_v20  ;;  %1126 = vmatpush3.bf16.msra.mxu1 %v1215_v63 }
  0x24   :  { %1109 = vmatprep.subr.bf16.mxu0 %v1316_v3  ;;  %1127 = vmatprep.subr.bf16.mxu1 %v1316_v3 }
  0x27   :  { %1110 = vmatpush3.bf16.msra.mxu0 %v1209_v21  ;;  %1128 = vmatpush3.bf16.msra.mxu1 %v1216_v2 }
  0x28   :  { %1111 = vmatprep.subr.bf16.mxu0 %v1316_v3  ;;  %1129 = vmatprep.subr.bf16.mxu1 %v1316_v3 }
  0x2b   :  { %1112 = vmatpush3.bf16.msra.mxu0 %v1210_v22  ;;  %1130 = vmatpush3.bf16.msra.mxu1 %v1217_v4  ;;  %v496_v4 = vld [vmem:[%s1515_s1] sm:$0xff] }
  0x2c   :  { %1131 = vmatprep.subr.bf16.mxu1 %v1316_v3 }
  0x97   :  { %v59_v6 = vpop.xlane.xlu0 %58 }
  0x98   :  { %v62_v7 = vmul.f32 0.03125, %v59_v6  ;;  %v1218_v6 = vld [vmem:[#allocation2 + $0x4] ss:$28 sps:$4 sm:$0xff]  }
  0x99   :  { %1132 = vmatpush3.bf16.msra.mxu1 %v1218_v6 }
  0x9a   :  { %v64_v8 = vsub.f32 %v1355_v0, %v62_v7  ;;  %1137 = vmatprep.subr.bf16.mxu1 %v1316_v3  ;;  %v1219_v7 = vld [vmem:[#allocation2 + $0x190] ss:$28 sps:$4 sm:$0xff]  }
  0x9b   :  { %v61_v9 = vpop.xlane.xlu0 %60 }
  0x9c   :  { %v63_v10 = vmul.f32 0.03125, %v61_v9  ;;  %v66_v11 = vsel %vm57_vm0, %v64_v8, 0.0  ;;  %v1221_v8 = vld [vmem:[#allocation2 + $0x194] ss:$28 sps:$4 sm:$0xff]   ;;  %v1224_v9 = vld [vmem:[#allocation2 + $0x15c] ss:$28 sps:$4 sm:$0xff]  }
  0x9d   :  { %v68_v12 = vmul.f32 %v66_v11, %v66_v11  ;;  %439 = vmatprep.subr.bf16.mxu0 %v1221_v8  ;;  %v497_v8 = vld [vmem:[%s1515_s1 + $0x8] sm:$0xff] }
  0x9e   :  { %v65_v13 = vsub.f32 %v1360_v1, %v63_v10  ;;  %v1222_v10 = vld [vmem:[#allocation2 + $0x158] ss:$28 sps:$4 sm:$0xff]  }
  0x9f   :  { %70 = vadd.xlane.f32.xlu1 %v68_v12  ;;  %v1225_v12 = vld [vmem:[#allocation2 + $0x120] ss:$28 sps:$4 sm:$0xff]  }
  0xa0   :  { %v67_v14 = vsel %vm57_vm0, %v65_v13, 0.0  ;;  %v1230_v13 = vld [vmem:[#allocation2 + $0xec] ss:$28 sps:$4 sm:$0xff]  }
  0xa1   :  { %v69_v15 = vmul.f32 %v67_v14, %v67_v14 }
  0xa3   :  { %72 = vadd.xlane.f32.xlu1 %v69_v15  ;;  %v1233_v15 = vld [vmem:[#allocation2 + $0xb4] ss:$28 sps:$4 sm:$0xff]  }
 0x128   :  { %v71_v23 = vpop.xlane.xlu1 %70 }
 0x129   :  { %v74_v24 = vmul.f32 0.03125, %v71_v23 }
 0x12b   :  { %v76_v25 = vadd.f32 1e-05, %v74_v24 }
 0x12c   :  { %v73_v26 = vpop.xlane.xlu1 %72 }
 0x12d   :  { %1267 = vrsqrt.f32 %v76_v25  ;;  %v75_v27 = vmul.f32 0.03125, %v73_v26 }
 0x12f   :  { %v77_v28 = vadd.f32 1e-05, %v75_v27  ;;  %v990_v27 = vld [vmem:[%s1517_s3 + $0x3] ss:$0 sm:$0xff] }
 0x131   :  { %1269 = vrsqrt.f32 %v77_v28 }
 0x13a   :  { %v1268_v29 = vpop.eup %1267 }
 0x13b   :  { %v80_v30 = vmul.f32 %v1268_v29, %v66_v11  ;;  %v1227_v11 = vld [vmem:[#allocation2 + $0x124] ss:$28 sps:$4 sm:$0xff]  }
 0x13d   :  { %v86_v34 = vmul.f32 %v979_v31, %v80_v30 }
 0x13e   :  { %v1270_v32 = vpop.eup %1269 }
 0x13f   :  { %v81_v33 = vmul.f32 %v1270_v32, %v67_v14  ;;  %v92_v37 = vadd.f32 %v980_v35, %v86_v34  ;;  %v1228_v14 = vld [vmem:[#allocation2 + $0xe8] ss:$28 sps:$4 sm:$0xff]  }
 0x141   :  { %v87_v36 = vmul.f32 %v979_v31, %v81_v33  ;;  %v991_v31 = vld [vmem:[%s1517_s3 + $0x4] ss:$0 sm:$0xff] }
 0x143   :  { %v93_v38 = vadd.f32 %v980_v35, %v87_v36  ;;  %v1239_v36 = vld [vmem:[#allocation2 + $0x44] ss:$28 sps:$4 sm:$0xff]  }
 0x145   :  { %v94_v39 = vpack.c.bf16 %v93_v38, %v92_v37  ;;  %v1237_v37 = vld [vmem:[#allocation2 + $0x40] ss:$28 sps:$4 sm:$0xff]   ;;  %v1242_v38 = vld [vmem:[#allocation2 + $0xc] ss:$28 sps:$4 sm:$0xff]  }
 0x147   :  { %1114 = vmatmul.mubr.bf16.vlgmr.msra.gmra.mxu0 %v94_v39  ;;  %v1240_v39 = vld [vmem:[#allocation2 + $0x8] ss:$28 sps:$4 sm:$0xff]  }
 0x148   :  { %440 = vmatpush1.bf16.msra.mxu0 %v1219_v7 }
 0x149   :  { %441 = vmatprep.subr.bf16.mxu0 %v1224_v9 }
 0x14c   :  { %442 = vmatpush1.bf16.msra.mxu0 %v1222_v10 }
 0x14d   :  { %443 = vmatprep.subr.bf16.mxu0 %v1227_v11 }
 0x150   :  { %444 = vmatpush1.bf16.msra.mxu0 %v1225_v12 }
 0x151   :  { %445 = vmatprep.subr.bf16.mxu0 %v1230_v13  ;;  %v1243_v13 = vld [vmem:[#allocation2 + $0x198] ss:$28 sps:$4 sm:$0xff]  }
 0x154   :  { %446 = vmatpush1.bf16.msra.mxu0 %v1228_v14 }
 0x155   :  { %447 = vmatprep.subr.bf16.mxu0 %v1233_v15 }
 0x158   :  { %448 = vmatpush1.bf16.msra.mxu0 %v1231_v16 }
 0x159   :  { %449 = vmatprep.subr.bf16.mxu0 %v1236_v17 }
 0x15c   :  { %450 = vmatpush1.bf16.msra.mxu0 %v1234_v18 }
 0x15d   :  { %451 = vmatprep.subr.bf16.mxu0 %v1239_v36 }
 0x160   :  { %452 = vmatpush1.bf16.msra.mxu0 %v1237_v37 }
 0x161   :  { %453 = vmatprep.subr.bf16.mxu0 %v1242_v38 }
 0x164   :  { %454 = vmatpush1.bf16.msra.mxu0 %v1240_v39  ;;  %v1019_v39 = vld [vmem:[%s1517_s3 + $0x8] ss:$0 sm:$0xff] }
 0x165   :  { %1157 = vmatprep.subr.bf16.mxu0 %v1316_v3 }
 0x207   :  { %v181_v41 = vpop.f32.mrf.mxu0 }
 0x208   :  { %v182_v42 = vadd.f32 %v981_v40, %v181_v41  ;;  %v992_v41 = vld [vmem:[%s1517_s3 + $0x5] ss:$0 sm:$0xff] }
 0x209   :  { %v1115_v43 = vpop.f32.mrf.mxu0 }
 0x20a   :  { %v188_v44 = vmax.f32 %v182_v42, 0.0 }
 0x20b   :  { %v184_v45 = vpop.f32.mrf.mxu0 }
 0x20c   :  { %v185_v46 = vadd.f32 %v981_v40, %v184_v45  ;;  %210 = vadd.xlane.f32.xlu0 %v188_v44  ;;  %v1318_v40 = vmov 0  }
 0x20d   :  { %v1116_v47 = vpop.f32.mrf.mxu0  ;;  %471 = vmatprep.mubr.bf16.mxu0 %v1318_v40 }
 0x20e   :  { %v189_v48 = vmax.f32 %v185_v46, 0.0 }
 0x210   :  { %212 = vadd.xlane.f32.xlu1 %v189_v48 }
 0x295   :  { %v211_v50 = vpop.xlane.xlu0 %210 }
 0x296   :  { %v214_v51 = vmul.f32 0.015625, %v211_v50 }
 0x298   :  { %v216_v52 = vsub.f32 %v188_v44, %v214_v51  ;;  %v1017_v51 = vld [vmem:[%s1517_s3 + $0x6] ss:$0 sm:$0xff] }
 0x299   :  { %v213_v53 = vpop.xlane.xlu1 %212 }
 0x29a   :  { %v215_v54 = vmul.f32 0.015625, %v213_v53  ;;  %v218_v55 = vsel %vm209_vm2, %v216_v52, 0.0  ;;  %v1018_v53 = vld [vmem:[%s1517_s3 + $0x7] ss:$0 sm:$0xff] }
 0x29b   :  { %v220_v56 = vmul.f32 %v218_v55, %v218_v55 }
 0x29c   :  { %v217_v57 = vsub.f32 %v189_v48, %v215_v54 }
 0x29d   :  { %222 = vadd.xlane.f32.xlu0 %v220_v56 }
 0x29e   :  { %v219_v58 = vsel %vm209_vm2, %v217_v57, 0.0 }
 0x29f   :  { %v221_v59 = vmul.f32 %v219_v58, %v219_v58 }
 0x2a1   :  { %224 = vadd.xlane.f32.xlu1 %v221_v59 }
 0x326   :  { %v223_v19 = vpop.xlane.xlu0 %222 }
 0x327   :  { %v226_v20 = vmul.f32 0.015625, %v223_v19 }
 0x329   :  { %v228_v21 = vadd.f32 1e-05, %v226_v20 }
 0x32a   :  { %v225_v22 = vpop.xlane.xlu1 %224 }
 0x32b   :  { %1271 = vrsqrt.f32 %v228_v21  ;;  %v227_v23 = vmul.f32 0.015625, %v225_v22 }
 0x32d   :  { %v229_v24 = vadd.f32 1e-05, %v227_v23 }
 0x32f   :  { %1273 = vrsqrt.f32 %v229_v24  ;;  %v1244_v24 = vld [vmem:[#allocation2 + $0x160] ss:$28 sps:$4 sm:$0xff]  }
 0x338   :  { %v1272_v25 = vpop.eup %1271 }
 0x339   :  { %v232_v26 = vmul.f32 %v1272_v25, %v218_v55  ;;  %v1245_v25 = vld [vmem:[#allocation2 + $0x128] ss:$28 sps:$4 sm:$0xff]  }
 0x33b   :  { %v238_v30 = vmul.f32 %v990_v27, %v232_v26  ;;  %v1246_v26 = vld [vmem:[#allocation2 + $0xf0] ss:$28 sps:$4 sm:$0xff]  }
 0x33c   :  { %v1274_v28 = vpop.eup %1273 }
 0x33d   :  { %v233_v29 = vmul.f32 %v1274_v28, %v219_v58  ;;  %v244_v33 = vadd.f32 %v991_v31, %v238_v30  ;;  %v1248_v28 = vld [vmem:[#allocation2 + $0x80] ss:$28 sps:$4 sm:$0xff]   ;;  %v1250_v30 = vld [vmem:[#allocation2 + $0x10] ss:$28 sps:$4 sm:$0xff]  }
 0x33f   :  { %v239_v32 = vmul.f32 %v990_v27, %v233_v29  ;;  %v1247_v27 = vld [vmem:[#allocation2 + $0xb8] ss:$28 sps:$4 sm:$0xff]   ;;  %v1249_v29 = vld [vmem:[#allocation2 + $0x48] ss:$28 sps:$4 sm:$0xff]  }
 0x341   :  { %v245_v34 = vadd.f32 %v991_v31, %v239_v32 }
 0x343   :  { %v246_v35 = vpack.c.bf16 %v245_v34, %v244_v33 }
 0x345   :  { %1134 = vmatmul.mubr.bf16.vlgmr.msra.gmra.mxu1 %v246_v35 }
 0x346   :  { %1153 = vmatprep.mubr.msk.bf16.mxu1 %vm1317_vm1, %v1316_v3  ;;  %1138 = vmatpush3.bf16.msra.mxu1 %v1243_v13  ;;  %v1257_v13 = vld [vmem:[#allocation2 + $0x4c] ss:$28 sps:$4 sm:$0xff]  }
 0x347   :  { %1139 = vmatprep.subr.bf16.mxu1 %v1316_v3 }
 0x34a   :  { %1140 = vmatpush3.bf16.msra.mxu1 %v1244_v24 }
 0x34b   :  { %1141 = vmatprep.subr.bf16.mxu1 %v1316_v3 }
 0x34e   :  { %1142 = vmatpush3.bf16.msra.mxu1 %v1245_v25 }
 0x34f   :  { %1143 = vmatprep.subr.bf16.mxu1 %v1316_v3 }
 0x352   :  { %1144 = vmatpush3.bf16.msra.mxu1 %v1246_v26 }
 0x353   :  { %1145 = vmatprep.subr.bf16.mxu1 %v1316_v3 }
 0x356   :  { %1146 = vmatpush3.bf16.msra.mxu1 %v1247_v27  ;;  %v1031_v27 = vld [vmem:[%s1517_s3 + $0xc] ss:$0 sm:$0xff] }
 0x357   :  { %1147 = vmatprep.subr.bf16.mxu1 %v1316_v3 }
 0x35a   :  { %1148 = vmatpush3.bf16.msra.mxu1 %v1248_v28 }
 0x35b   :  { %1149 = vmatprep.subr.bf16.mxu1 %v1316_v3 }
 0x35e   :  { %1150 = vmatpush3.bf16.msra.mxu1 %v1249_v29 }
 0x35f   :  { %1151 = vmatprep.subr.bf16.mxu1 %v1316_v3 }
 0x362   :  { %1152 = vmatpush3.bf16.msra.mxu1 %v1250_v30 }
 0x363   :  { %1177 = vmatprep.subr.bf16.mxu1 %v1316_v3 }
 0x405   :  { %v333_v42 = vpop.f32.mrf.mxu1 }
 0x406   :  { %v334_v44 = vadd.f32 %v992_v41, %v333_v42 }
 0x407   :  { %v1135_v43 = vpop.f32.mrf.mxu1 }
 0x408   :  { %v340_v48 = vmax.f32 %v334_v44, 0.0  ;;  %v1020_v43 = vld [vmem:[%s1517_s3 + $0x9] ss:$0 sm:$0xff] }
 0x409   :  { %v336_v45 = vpop.f32.mrf.mxu1 }
 0x40a   :  { %v337_v46 = vadd.f32 %v992_v41, %v336_v45 }
 0x40b   :  { %v1136_v47 = vpop.f32.mrf.mxu1 }
 0x40c   :  { %v341_v49 = vmax.f32 %v337_v46, 0.0 }
 0x40e   :  { %v358_v50 = vpack.c.bf16 %v341_v49, %v340_v48  ;;  %v1021_v48 = vld [vmem:[%s1517_s3 + $0xa] ss:$0 sm:$0xff] }
 0x410   :  { %472 = vmatmul.mubr.bf16.vlgmr.msra.gmra.mxu0 %v358_v50 }
 0x411   :  { %1173 = vmatprep.mubr.msk.bf16.mxu0 %vm1317_vm1, %v1316_v3 }
 0x4d0   :  { %v473_v52 = vpop.f32.mrf.mxu0 }
 0x4d1   :  { %v487_v54 = vadd.f32 %v1017_v51, %v473_v52 }
 0x4d2   :  { %v475_v55 = vpop.f32.mrf.mxu0 }
 0x4d3   :  { %966 = vst [vmem:[%s1519_s5] sm:$0xff] %v487_v54  ;;  %v494_v56 = vadd.f32 %v1018_v53, %v475_v55 }
 0x4d4   :  { %v477_v57 = vpop.f32.mrf.mxu0 }
 0x4d5   :  { %v498_v58 = vmul.f32 0.5, %v494_v56  ;;  %968 = vst [vmem:[%s1519_s5 + $0x8] sm:$0xff] %v494_v56  ;;  %v488_v59 = vadd.f32 %v1017_v51, %v477_v57  ;;  %v1251_v57 = vld [vmem:[#allocation2 + $0x19c] ss:$28 sps:$4 sm:$0xff]  }
 0x4d6   :  { %v479_v60 = vpop.f32.mrf.mxu0  ;;  %1158 = vmatpush3.bf16.msra.mxu0 %v1251_v57  ;;  %v1266_v57 = vld [vmem:[#allocation2 + $0x18] ss:$28 sps:$4 sm:$0xff]  }
 0x4d7   :  { %v500_v61 = vmul.f32 1.442695, %v498_v58  ;;  %967 = vst [vmem:[%s1519_s5 + $0x10] sm:$0xff] %v488_v59  ;;  %v495_v62 = vadd.f32 %v1018_v53, %v479_v60  ;;  %1159 = vmatprep.subr.bf16.mxu0 %v1316_v3 }
 0x4d9   :  { %1275 = vpow2.f32 %v500_v61  ;;  %v499_v63 = vmul.f32 0.5, %v495_v62  ;;  %969 = vst [vmem:[%s1519_s5 + $0x18] sm:$0xff] %v495_v62 }
 0x4db   :  { %v502_v2 = vmul.f32 1.442695, %v499_v63 }
 0x4dd   :  { %1277 = vpow2.f32 %v502_v2 }
 0x4e6   :  { %v1276_v6 = vpop.eup %1275 }
 0x4e7   :  { %v504_v7 = vmul.f32 %v1276_v6, %v496_v4 }
 0x4e9   :  { %v506_v9 = vadd.f32 %v504_v7, %v487_v54 }
 0x4ea   :  { %v1278_v10 = vpop.eup %1277 }
 0x4eb   :  { %528 = vadd.xlane.f32.xlu0 %v506_v9  ;;  %v505_v11 = vmul.f32 %v1278_v10, %v497_v8  ;;  %v1252_v8 = vld [vmem:[#allocation2 + $0x164] ss:$28 sps:$4 sm:$0xff]   ;;  %v1254_v10 = vld [vmem:[#allocation2 + $0xf4] ss:$28 sps:$4 sm:$0xff]  }
 0x4ec   :  { %1160 = vmatpush3.bf16.msra.mxu0 %v1252_v8 }
 0x4ed   :  { %v507_v12 = vadd.f32 %v505_v11, %v488_v59  ;;  %1161 = vmatprep.subr.bf16.mxu0 %v1316_v3  ;;  %v1255_v11 = vld [vmem:[#allocation2 + $0xbc] ss:$28 sps:$4 sm:$0xff]  }
 0x4ef   :  { %530 = vadd.xlane.f32.xlu1 %v507_v12 }
 0x574   :  { %v529_v14 = vpop.xlane.xlu0 %528 }
 0x575   :  { %v532_v15 = vmul.f32 0.0625, %v529_v14  ;;  %v1258_v14 = vld [vmem:[#allocation2 + $0x14] ss:$28 sps:$4 sm:$0xff]  }
 0x577   :  { %v534_v16 = vsub.f32 %v506_v9, %v532_v15  ;;  %v1253_v9 = vld [vmem:[#allocation2 + $0x12c] ss:$28 sps:$4 sm:$0xff]  }
 0x578   :  { %v531_v17 = vpop.xlane.xlu1 %530  ;;  %1162 = vmatpush3.bf16.msra.mxu0 %v1253_v9 }
 0x579   :  { %v533_v18 = vmul.f32 0.0625, %v531_v17  ;;  %v536_v19 = vsel %vm527_vm3, %v534_v16, 0.0  ;;  %1163 = vmatprep.subr.bf16.mxu0 %v1316_v3 }
 0x57a   :  { %v538_v20 = vmul.f32 %v536_v19, %v536_v19 }
 0x57b   :  { %v535_v21 = vsub.f32 %v507_v12, %v533_v18  ;;  %v1256_v12 = vld [vmem:[#allocation2 + $0x84] ss:$28 sps:$4 sm:$0xff]  }
 0x57c   :  { %540 = vadd.xlane.f32.xlu0 %v538_v20  ;;  %1164 = vmatpush3.bf16.msra.mxu0 %v1254_v10 }
 0x57d   :  { %v537_v22 = vsel %vm527_vm3, %v535_v21, 0.0  ;;  %1165 = vmatprep.subr.bf16.mxu0 %v1316_v3 }
 0x57e   :  { %v539_v23 = vmul.f32 %v537_v22, %v537_v22 }
 0x580   :  { %542 = vadd.xlane.f32.xlu1 %v539_v23  ;;  %1166 = vmatpush3.bf16.msra.mxu0 %v1255_v11  ;;  %v1030_v23 = vld [vmem:[%s1517_s3 + $0xb] ss:$0 sm:$0xff] }
 0x581   :  { %1167 = vmatprep.subr.bf16.mxu0 %v1316_v3 }
 0x584   :  { %1168 = vmatpush3.bf16.msra.mxu0 %v1256_v12 }
 0x585   :  { %1169 = vmatprep.subr.bf16.mxu0 %v1316_v3 }
 0x588   :  { %1170 = vmatpush3.bf16.msra.mxu0 %v1257_v13 }
 0x589   :  { %1171 = vmatprep.subr.bf16.mxu0 %v1316_v3 }
 0x58c   :  { %1172 = vmatpush3.bf16.msra.mxu0 %v1258_v14  ;;  %v1043_v14 = vld [vmem:[%s1517_s3 + $0x10] ss:$0 sm:$0xff] }
 0x605   :  { %v541_v31 = vpop.xlane.xlu0 %540 }
 0x606   :  { %v544_v32 = vmul.f32 0.0625, %v541_v31 }
 0x608   :  { %v546_v33 = vadd.f32 1e-05, %v544_v32  ;;  %v1032_v32 = vld [vmem:[%s1517_s3 + $0xd] ss:$0 sm:$0xff] }
 0x609   :  { %v543_v34 = vpop.xlane.xlu1 %542 }
 0x60a   :  { %1279 = vrsqrt.f32 %v546_v33  ;;  %v545_v35 = vmul.f32 0.0625, %v543_v34 }
 0x60c   :  { %v547_v36 = vadd.f32 1e-05, %v545_v35 }
 0x60e   :  { %1281 = vrsqrt.f32 %v547_v36 }
 0x617   :  { %v1280_v37 = vpop.eup %1279 }
 0x618   :  { %v550_v38 = vmul.f32 %v1280_v37, %v536_v19 }
 0x61a   :  { %v556_v42 = vmul.f32 %v1019_v39, %v550_v38 }
 0x61b   :  { %v1282_v40 = vpop.eup %1281 }
 0x61c   :  { %v551_v41 = vmul.f32 %v1282_v40, %v537_v22  ;;  %v562_v45 = vadd.f32 %v1020_v43, %v556_v42 }
 0x61e   :  { %v557_v44 = vmul.f32 %v1019_v39, %v551_v41  ;;  %v1259_v41 = vld [vmem:[#allocation2 + $0x1a0] ss:$28 sps:$4 sm:$0xff]  }
 0x620   :  { %v563_v46 = vadd.f32 %v1020_v43, %v557_v44 }
 0x622   :  { %v564_v47 = vpack.c.bf16 %v563_v46, %v562_v45 }
 0x624   :  { %1154 = vmatmul.mubr.bf16.vlgmr.msra.gmra.mxu1 %v564_v47 }
 0x625   :  { %1193 = vmatprep.mubr.msk.bf16.mxu1 %vm1317_vm1, %v1316_v3  ;;  %1178 = vmatpush3.bf16.msra.mxu1 %v1259_v41 }
 0x626   :  { %1179 = vmatprep.subr.bf16.mxu1 %v1316_v3 }
 0x6e4   :  { %v651_v49 = vpop.f32.mrf.mxu1 }
 0x6e5   :  { %v652_v50 = vadd.f32 %v1021_v48, %v651_v49 }
 0x6e6   :  { %v1155_v51 = vpop.f32.mrf.mxu1 }
 0x6e7   :  { %v658_v52 = vmax.f32 %v652_v50, 0.0 }
 0x6e8   :  { %v654_v53 = vpop.f32.mrf.mxu1 }
 0x6e9   :  { %v655_v54 = vadd.f32 %v1021_v48, %v654_v53  ;;  %679 = vadd.xlane.f32.xlu0 %v658_v52  ;;  %v1261_v53 = vld [vmem:[#allocation2 + $0x130] ss:$28 sps:$4 sm:$0xff]  }
 0x6ea   :  { %v1156_v55 = vpop.f32.mrf.mxu1 }
 0x6eb   :  { %v659_v56 = vmax.f32 %v655_v54, 0.0  ;;  %v1262_v54 = vld [vmem:[#allocation2 + $0xf8] ss:$28 sps:$4 sm:$0xff]   ;;  %v1263_v55 = vld [vmem:[#allocation2 + $0xc0] ss:$28 sps:$4 sm:$0xff]  }
 0x6ed   :  { %681 = vadd.xlane.f32.xlu1 %v659_v56 }
 0x772   :  { %v680_v58 = vpop.xlane.xlu0 %679 }
 0x773   :  { %v683_v59 = vmul.f32 0.03125, %v680_v58 }
 0x775   :  { %v685_v60 = vsub.f32 %v658_v52, %v683_v59  ;;  %v1260_v52 = vld [vmem:[#allocation2 + $0x168] ss:$28 sps:$4 sm:$0xff]  }
 0x776   :  { %v682_v61 = vpop.xlane.xlu1 %681  ;;  %1180 = vmatpush3.bf16.msra.mxu1 %v1260_v52 }
 0x777   :  { %v684_v62 = vmul.f32 0.03125, %v682_v61  ;;  %v687_v63 = vsel %vm57_vm0, %v685_v60, 0.0  ;;  %1181 = vmatprep.subr.bf16.mxu1 %v1316_v3 }
 0x778   :  { %v689_v2 = vmul.f32 %v687_v63, %v687_v63 }
 0x779   :  { %v686_v4 = vsub.f32 %v659_v56, %v684_v62  ;;  %v1264_v56 = vld [vmem:[#allocation2 + $0x88] ss:$28 sps:$4 sm:$0xff]  }
 0x77a   :  { %691 = vadd.xlane.f32.xlu0 %v689_v2  ;;  %1182 = vmatpush3.bf16.msra.mxu1 %v1261_v53 }
 0x77b   :  { %v688_v6 = vsel %vm57_vm0, %v686_v4, 0.0  ;;  %1183 = vmatprep.subr.bf16.mxu1 %v1316_v3 }
 0x77c   :  { %v690_v7 = vmul.f32 %v688_v6, %v688_v6 }
 0x77e   :  { %693 = vadd.xlane.f32.xlu1 %v690_v7  ;;  %1184 = vmatpush3.bf16.msra.mxu1 %v1262_v54 }
 0x77f   :  { %1185 = vmatprep.subr.bf16.mxu1 %v1316_v3 }
 0x782   :  { %1186 = vmatpush3.bf16.msra.mxu1 %v1263_v55 }
 0x783   :  { %1187 = vmatprep.subr.bf16.mxu1 %v1316_v3 }
 0x786   :  { %1188 = vmatpush3.bf16.msra.mxu1 %v1264_v56 }
 0x787   :  { %1189 = vmatprep.subr.bf16.mxu1 %v1316_v3 }
 0x78a   :  { %1190 = vmatpush3.bf16.msra.mxu1 %v1265_v5 }
 0x78b   :  { %1191 = vmatprep.subr.bf16.mxu1 %v1316_v3  ;;  %v1042_v3 = vld [vmem:[%s1517_s3 + $0xf] ss:$0 sm:$0xff] }
 0x78e   :  { %1192 = vmatpush3.bf16.msra.mxu1 %v1266_v57 }
 0x803   :  { %v692_v15 = vpop.xlane.xlu0 %691 }
 0x804   :  { %v695_v16 = vmul.f32 0.03125, %v692_v15 }
 0x806   :  { %v697_v17 = vadd.f32 1e-05, %v695_v16 }
 0x807   :  { %v694_v18 = vpop.xlane.xlu1 %693 }
 0x808   :  { %1283 = vrsqrt.f32 %v697_v17  ;;  %v696_v19 = vmul.f32 0.03125, %v694_v18 }
 0x80a   :  { %v698_v20 = vadd.f32 1e-05, %v696_v19 }
 0x80c   :  { %1285 = vrsqrt.f32 %v698_v20 }
 0x815   :  { %v1284_v21 = vpop.eup %1283 }
 0x816   :  { %v701_v22 = vmul.f32 %v1284_v21, %v687_v63 }
 0x818   :  { %v707_v26 = vmul.f32 %v1030_v23, %v701_v22 }
 0x819   :  { %v1286_v24 = vpop.eup %1285 }
 0x81a   :  { %v702_v25 = vmul.f32 %v1286_v24, %v688_v6  ;;  %v713_v29 = vadd.f32 %v1031_v27, %v707_v26  ;;  %v1041_v6 = vld [vmem:[%s1517_s3 + $0xe] ss:$0 sm:$0xff] }
 0x81c   :  { %v708_v28 = vmul.f32 %v1030_v23, %v702_v25 }
 0x81e   :  { %v714_v30 = vadd.f32 %v1031_v27, %v708_v28 }
 0x820   :  { %v715_v31 = vpack.c.bf16 %v714_v30, %v713_v29 }
 0x822   :  { %1174 = vmatmul.mubr.bf16.vlgmr.msra.gmra.mxu0 %v715_v31 }
 0x8e2   :  { %v802_v33 = vpop.f32.mrf.mxu0 }
 0x8e3   :  { %v803_v34 = vadd.f32 %v1032_v32, %v802_v33 }
 0x8e4   :  { %v1175_v35 = vpop.f32.mrf.mxu0 }
 0x8e5   :  { %v809_v36 = vmax.f32 %v803_v34, 0.0 }
 0x8e6   :  { %v805_v37 = vpop.f32.mrf.mxu0 }
 0x8e7   :  { %v806_v38 = vadd.f32 %v1032_v32, %v805_v37  ;;  %830 = vadd.xlane.f32.xlu0 %v809_v36 }
 0x8e8   :  { %v1176_v39 = vpop.f32.mrf.mxu0 }
 0x8e9   :  { %v810_v40 = vmax.f32 %v806_v38, 0.0 }
 0x8eb   :  { %832 = vadd.xlane.f32.xlu1 %v810_v40 }
 0x970   :  { %v831_v42 = vpop.xlane.xlu0 %830 }
 0x971   :  { %v834_v43 = vmul.f32 0.015625, %v831_v42 }
 0x973   :  { %v836_v44 = vsub.f32 %v809_v36, %v834_v43 }
 0x974   :  { %v833_v45 = vpop.xlane.xlu1 %832 }
 0x975   :  { %v835_v46 = vmul.f32 0.015625, %v833_v45  ;;  %v838_v47 = vsel %vm209_vm2, %v836_v44, 0.0 }
 0x976   :  { %v840_v48 = vmul.f32 %v838_v47, %v838_v47 }
 0x977   :  { %v837_v49 = vsub.f32 %v810_v40, %v835_v46 }
 0x978   :  { %842 = vadd.xlane.f32.xlu0 %v840_v48 }
 0x979   :  { %v839_v50 = vsel %vm209_vm2, %v837_v49, 0.0 }
 0x97a   :  { %v841_v51 = vmul.f32 %v839_v50, %v839_v50 }
 0x97c   :  { %844 = vadd.xlane.f32.xlu1 %v841_v51 }
 0xa01   :  { %v843_v58 = vpop.xlane.xlu0 %842 }
 0xa02   :  { %v846_v59 = vmul.f32 0.015625, %v843_v58 }
 0xa04   :  { %v848_v60 = vadd.f32 1e-05, %v846_v59 }
 0xa05   :  { %v845_v61 = vpop.xlane.xlu1 %844 }
 0xa06   :  { %1287 = vrsqrt.f32 %v848_v60  ;;  %v847_v62 = vmul.f32 0.015625, %v845_v61 }
 0xa08   :  { %v849_v63 = vadd.f32 1e-05, %v847_v62 }
 0xa0a   :  { %1289 = vrsqrt.f32 %v849_v63 }
 0xa13   :  { %v1288_v2 = vpop.eup %1287 }
 0xa14   :  { %v852_v4 = vmul.f32 %v1288_v2, %v838_v47 }
 0xa16   :  { %v858_v9 = vmul.f32 %v1041_v6, %v852_v4 }
 0xa17   :  { %v1290_v7 = vpop.eup %1289 }
 0xa18   :  { %v853_v8 = vmul.f32 %v1290_v7, %v839_v50  ;;  %v864_v11 = vadd.f32 %v1042_v3, %v858_v9 }
 0xa1a   :  { %v859_v10 = vmul.f32 %v1041_v6, %v853_v8 }
 0xa1c   :  { %v865_v12 = vadd.f32 %v1042_v3, %v859_v10 }
 0xa1e   :  { %v866_v13 = vpack.c.bf16 %v865_v12, %v864_v11 }
 0xa20   :  { %1194 = vmatmul.mubr.bf16.vlgmr.msra.gmra.mxu1 %v866_v13 }
 0xae0   :  { %v953_v15 = vpop.f32.mrf.mxu1 }
 0xae1   :  { %v954_v16 = vadd.f32 %v1043_v14, %v953_v15 }
 0xae2   :  { %v1195_v17 = vpop.f32.mrf.mxu1 }
 0xae3   :  { %v960_v18 = vmax.f32 %v954_v16, 0.0 }
 0xae4   :  { %v956_v19 = vpop.f32.mrf.mxu1 }
 0xae5   :  { %v962_v20 = vadd.f32 %v960_v18, %v1355_v0  ;;  %v957_v21 = vadd.f32 %v1043_v14, %v956_v19 }
 0xae6   :  { %v1196_v22 = vpop.f32.mrf.mxu1 }
 0xae7   :  { %964 = vst [vmem:[%s1518_s4] sm:$0xff] %v962_v20  ;;  %v961_v23 = vmax.f32 %v957_v21, 0.0 }
 0xae9   :  { %v963_v24 = vadd.f32 %v961_v23, %v1360_v1 }
 0xaeb   :  { %965 = vst [vmem:[%s1518_s4 + $0x8] sm:$0xff] %v963_v24 }
 0xaec   :  { %978 = vsyncpa [#allocation3], 1 }

</bundles_post_ra>
